<compile_context>
chip_gen: v5e
topology: v5e:2x2
jax: 0.10.0
libtpu: 0.0.40
codegen_flags: <defaults>
</compile_context>

<pallas_src>
import numpy as np
import jax
import jax.numpy as jnp
from jax.experimental import pallas as pl
from jax.experimental.pallas import tpu as pltpu


# ----------------------------- configuration --------------------------------
NUM_CLASS = 4
NUM_HEADING_BIN = 2
NUM_SIZE_CLUSTER = 3            # == len(mean_size_arr)
NUM_PROPOSAL = 128              # N (proposal points after FPS / aggregation)
PN2_OUTPUT_NC = 32              # vote_aggregation_config.down_conv_nn[-1][-1]
BATCH = 2

OUTPUT_FEAT = 2 + 3 + NUM_HEADING_BIN * 2 + NUM_SIZE_CLUSTER * 4 + NUM_CLASS  # 25
MID_FEAT = (PN2_OUTPUT_NC + OUTPUT_FEAT) // 2                                 # 28
BN_EPS = 1e-5


def _round_up(x, m):
    return (x + m - 1) // m * m


# Round to 16 (bf16 packs 16 rows per sublane group), not 8.
CIN_PAD = _round_up(PN2_OUTPUT_NC, 16)   # 32
MID_PAD = _round_up(MID_FEAT, 16)        # 32
OUT_PAD = _round_up(OUTPUT_FEAT, 16)     # 32
# Common square size so the three 1x1-conv weights stack into one operand.
PAD = max(CIN_PAD, MID_PAD, OUT_PAD)     # 32
assert PAD == CIN_PAD, "kernel assumes input channels already fill the pad"


# ------------------------------- kernel --------------------------------------
def proposal_head_kernel(x_ref, w_ref, b_ref, o_ref):
    """x_ref: (B, PAD, N) f32   aggregated per-proposal features
       w_ref: (3, PAD, PAD) bf16  folded+padded conv1/conv2/conv3 weights
       b_ref: (3, PAD, 1)  f32   folded+padded biases
       o_ref: (B, PAD, N)  f32   padded output slab (rows >= OUTPUT_FEAT are 0)
    """
    w1 = w_ref[0]
    w2 = w_ref[1]
    w3 = w_ref[2]
    b1 = b_ref[0]
    b2 = b_ref[1]
    b3 = b_ref[2]

    B = x_ref.shape[0]
    for b in range(B):                      # static, unrolled (B is tiny)
        x = x_ref[b].astype(jnp.bfloat16)

        # conv1 (1x1) + folded bn1 -> relu   (bf16 MXU, f32 accumulate/epilogue)
        h = jnp.dot(w1, x, preferred_element_type=jnp.float32) + b1
        h = jnp.maximum(h, 0.0)

        # conv2 (1x1) + folded bn2 -> relu
        h = jnp.dot(w2, h.astype(jnp.bfloat16),
                    preferred_element_type=jnp.float32) + b2
        h = jnp.maximum(h, 0.0)

        # conv3 (1x1), no activation
        h = jnp.dot(w3, h.astype(jnp.bfloat16),
                    preferred_element_type=jnp.float32) + b3

        o_ref[b] = h


def proposal_head(feat, w_stack, b_stack):
    """feat: (B, PN2_OUTPUT_NC, N) f32 -> (B, OUTPUT_FEAT, N) f32."""
    B, Cin, N = feat.shape

    out_padded = pl.pallas_call(
        proposal_head_kernel,
        out_shape=jax.ShapeDtypeStruct((B, PAD, N), jnp.float32),
        in_specs=[
            pl.BlockSpec(memory_space=pltpu.MemorySpace.VMEM),
            pl.BlockSpec(memory_space=pltpu.MemorySpace.VMEM),
            pl.BlockSpec(memory_space=pltpu.MemorySpace.VMEM),
        ],
        out_specs=pl.BlockSpec(memory_space=pltpu.MemorySpace.VMEM),
    )(feat, w_stack, b_stack)

    # Downstream decode could consume the padded slab directly; the module's
    # forward contract is the 25-channel logits tensor, so slice here (cheap,
    # inside jit).
    return out_padded[:, :OUTPUT_FEAT, :]


forward = jax.jit(proposal_head)


# --------------------------- parameter preparation ---------------------------
def prepare_params(params):
    """One-time host prep: fold BN into 1x1-conv weights, zero-pad channel dims
    to a common 16-aligned square, cast weights to bf16, stack into two
    operands.  Done once at init, not per forward call."""
    (w1, b1, s1, t1, w2, b2, s2, t2, w3, b3) = params

    # Fold BatchNorm (eval mode) into conv weights / biases (f32).
    w1f = s1 * w1
    b1f = s1 * b1 + t1
    w2f = s2 * w2
    b2f = s2 * b2 + t2
    w3f, b3f = w3, b3

    def pad2d(arr, rows, cols):
        return jnp.pad(arr, ((0, rows - arr.shape[0]), (0, cols - arr.shape[1])))

    # Zero padding keeps padded output rows exactly 0 through relu and makes
    # padded columns of the next layer multiply zeros (safe).
    w1p = pad2d(w1f, PAD, PAD)
    w2p = pad2d(w2f, PAD, PAD)
    w3p = pad2d(w3f, PAD, PAD)
    b1p = pad2d(b1f, PAD, 1)
    b2p = pad2d(b2f, PAD, 1)
    b3p = pad2d(b3f, PAD, 1)

    w_stack = jnp.stack([w1p, w2p, w3p]).astype(jnp.bfloat16)   # (3, 32, 32)
    b_stack = jnp.stack([b1p, b2p, b3p]).astype(jnp.float32)    # (3, 32, 1)
    return jax.device_put(w_stack), jax.device_put(b_stack)


# --------------------------- parameter construction --------------------------
def make_params(key):
    ks = jax.random.split(key, 14)

    def conv_w(k, cout, cin):
        # PyTorch Conv1d weight is (Cout, Cin, 1); kernel-size-1 -> (Cout, Cin).
        bound = 1.0 / np.sqrt(cin)
        return jax.random.uniform(k, (cout, cin), jnp.float32, -bound, bound)

    def conv_b(k, cout, cin):
        bound = 1.0 / np.sqrt(cin)
        return jax.random.uniform(k, (cout, 1), jnp.float32, -bound, bound)

    def bn_fold(kg, kb, km, kv, c):
        gamma = 1.0 + 0.1 * jax.random.normal(kg, (c, 1), jnp.float32)
        beta = 0.1 * jax.random.normal(kb, (c, 1), jnp.float32)
        mean = 0.1 * jax.random.normal(km, (c, 1), jnp.float32)
        var = jnp.abs(jax.random.normal(kv, (c, 1), jnp.float32)) + 0.5
        scale = gamma / jnp.sqrt(var + BN_EPS)
        shift = beta - mean * scale
        return scale, shift

    w1 = conv_w(ks[0], PN2_OUTPUT_NC, PN2_OUTPUT_NC)
    b1 = conv_b(ks[1], PN2_OUTPUT_NC, PN2_OUTPUT_NC)
    s1, t1 = bn_fold(ks[2], ks[3], ks[4], ks[5], PN2_OUTPUT_NC)

    w2 = conv_w(ks[6], MID_FEAT, PN2_OUTPUT_NC)
    b2 = conv_b(ks[7], MID_FEAT, PN2_OUTPUT_NC)
    s2, t2 = bn_fold(ks[8], ks[9], ks[10], ks[11], MID_FEAT)

    w3 = conv_w(ks[12], OUTPUT_FEAT, MID_FEAT)
    b3 = conv_b(ks[13], OUTPUT_FEAT, MID_FEAT)

    return (w1, b1, s1, t1, w2, b2, s2, t2, w3, b3)


def reference_head(feat, params):
    """Pure-JAX f32 reference matching the PyTorch module's forward (eval BN)."""
    (w1, b1, s1, t1, w2, b2, s2, t2, w3, b3) = params
    h = jnp.einsum("oc,bcn->bon", w1, feat) + b1[None]
    h = jnp.maximum(s1[None] * h + t1[None], 0.0)
    h = jnp.einsum("oc,bcn->bon", w2, h) + b2[None]
    h = jnp.maximum(s2[None] * h + t2[None], 0.0)
    h = jnp.einsum("oc,bcn->bon", w3, h) + b3[None]
    return h


# ----------------------------------- main ------------------------------------
if __name__ == "__main__":
    key = jax.random.PRNGKey(0)
    k_feat, k_params, k_msa = jax.random.split(key, 3)

    # mean_size_arr (non-trainable parameter of the module; consumed by
    # VoteNetResults.from_logits downstream, not by the head MLP itself).
    mean_size_arr = jnp.abs(
        jax.random.normal(k_msa, (NUM_SIZE_CLUSTER, 3), jnp.float32))

    # Synthetic output of the vote aggregation (PointNetMSGDown) stage:
    # data_features.x with shape (B, pn2_output_nc, num_proposal).
    feat = jax.random.normal(
        k_feat, (BATCH, PN2_OUTPUT_NC, NUM_PROPOSAL), jnp.float32)

    params = make_params(k_params)
    w_stack, b_stack = prepare_params(params)       # once, at init

    out = forward(feat, w_stack, b_stack)
    out = jax.block_until_ready(out)

    ref = jax.block_until_ready(reference_head(feat, params))
    assert out.shape == (BATCH, OUTPUT_FEAT, NUM_PROPOSAL)
    # bf16 MXU inputs with f32 accumulation -> relaxed tolerance vs f32 reference
    np.testing.assert_allclose(np.asarray(out), np.asarray(ref),
                               rtol=2e-2, atol=2e-2)

    print("KERNEL_OK")
</pallas_src>

<mosaic_0001>
module attributes {stable_mosaic.version = 11 : i64} {
  func.func @proposal_head_kernel(%arg0: memref<2x32x128xf32, #tpu.memory_space<vmem>>, %arg1: memref<3x32x32xbf16, #tpu.memory_space<vmem>>, %arg2: memref<3x32x1xf32, #tpu.memory_space<vmem>>, %arg3: memref<2x32x128xf32, #tpu.memory_space<vmem>>) attributes {dimension_semantics = [], scalar_prefetch = 0 : i64, scratch_operands = 0 : i64, tpu.core_type = #tpu.core_type<tc>} {
    %c0 = arith.constant 0 : index
    %c0_0 = arith.constant 0 : index
    %c0_1 = arith.constant 0 : index
    %0 = vector.load %arg1[%c0, %c0_0, %c0_1] : memref<3x32x32xbf16, #tpu.memory_space<vmem>>, vector<1x32x32xbf16>
    %1 = vector.shape_cast %0 : vector<1x32x32xbf16> to vector<32x32xbf16>
    %c1 = arith.constant 1 : index
    %c0_2 = arith.constant 0 : index
    %c0_3 = arith.constant 0 : index
    %2 = vector.load %arg1[%c1, %c0_2, %c0_3] : memref<3x32x32xbf16, #tpu.memory_space<vmem>>, vector<1x32x32xbf16>
    %3 = vector.shape_cast %2 : vector<1x32x32xbf16> to vector<32x32xbf16>
    %c2 = arith.constant 2 : index
    %c0_4 = arith.constant 0 : index
    %c0_5 = arith.constant 0 : index
    %4 = vector.load %arg1[%c2, %c0_4, %c0_5] : memref<3x32x32xbf16, #tpu.memory_space<vmem>>, vector<1x32x32xbf16>
    %5 = vector.shape_cast %4 : vector<1x32x32xbf16> to vector<32x32xbf16>
    %c0_6 = arith.constant 0 : index
    %c0_7 = arith.constant 0 : index
    %c0_8 = arith.constant 0 : index
    %6 = vector.load %arg2[%c0_6, %c0_7, %c0_8] : memref<3x32x1xf32, #tpu.memory_space<vmem>>, vector<1x32x1xf32>
    %7 = vector.shape_cast %6 : vector<1x32x1xf32> to vector<32x1xf32>
    %c1_9 = arith.constant 1 : index
    %c0_10 = arith.constant 0 : index
    %c0_11 = arith.constant 0 : index
    %8 = vector.load %arg2[%c1_9, %c0_10, %c0_11] : memref<3x32x1xf32, #tpu.memory_space<vmem>>, vector<1x32x1xf32>
    %9 = vector.shape_cast %8 : vector<1x32x1xf32> to vector<32x1xf32>
    %c2_12 = arith.constant 2 : index
    %c0_13 = arith.constant 0 : index
    %c0_14 = arith.constant 0 : index
    %10 = vector.load %arg2[%c2_12, %c0_13, %c0_14] : memref<3x32x1xf32, #tpu.memory_space<vmem>>, vector<1x32x1xf32>
    %11 = vector.shape_cast %10 : vector<1x32x1xf32> to vector<32x1xf32>
    %c0_15 = arith.constant 0 : index
    %c0_16 = arith.constant 0 : index
    %c0_17 = arith.constant 0 : index
    %12 = vector.load %arg0[%c0_15, %c0_16, %c0_17] : memref<2x32x128xf32, #tpu.memory_space<vmem>>, vector<1x32x128xf32>
    %13 = vector.shape_cast %12 : vector<1x32x128xf32> to vector<32x128xf32>
    %14 = arith.truncf %13 : vector<32x128xf32> to vector<32x128xbf16>
    %cst = arith.constant dense<0.000000e+00> : vector<32x128xf32>
    %15 = tpu.matmul %1, %14, %cst {dimension_numbers = #tpu.dot_dimension_numbers<[1], [0], [0], [1], [0, 0, 1, 1], [], []>} : vector<32x32xbf16>, vector<32x128xbf16>, vector<32x128xf32> -> vector<32x128xf32>
    %16 = vector.broadcast %7 : vector<32x1xf32> to vector<32x128xf32>
    %17 = arith.addf %15, %16 : vector<32x128xf32>
    %cst_18 = arith.constant 0.000000e+00 : f32
    %18 = vector.broadcast %cst_18 : f32 to vector<32x128xf32>
    %19 = arith.maximumf %17, %18 : vector<32x128xf32>
    %20 = arith.truncf %19 : vector<32x128xf32> to vector<32x128xbf16>
    %cst_19 = arith.constant dense<0.000000e+00> : vector<32x128xf32>
    %21 = tpu.matmul %3, %20, %cst_19 {dimension_numbers = #tpu.dot_dimension_numbers<[1], [0], [0], [1], [0, 0, 1, 1], [], []>} : vector<32x32xbf16>, vector<32x128xbf16>, vector<32x128xf32> -> vector<32x128xf32>
    %22 = vector.broadcast %9 : vector<32x1xf32> to vector<32x128xf32>
    %23 = arith.addf %21, %22 : vector<32x128xf32>
    %cst_20 = arith.constant 0.000000e+00 : f32
    %24 = vector.broadcast %cst_20 : f32 to vector<32x128xf32>
    %25 = arith.maximumf %23, %24 : vector<32x128xf32>
    %26 = arith.truncf %25 : vector<32x128xf32> to vector<32x128xbf16>
    %cst_21 = arith.constant dense<0.000000e+00> : vector<32x128xf32>
    %27 = tpu.matmul %5, %26, %cst_21 {dimension_numbers = #tpu.dot_dimension_numbers<[1], [0], [0], [1], [0, 0, 1, 1], [], []>} : vector<32x32xbf16>, vector<32x128xbf16>, vector<32x128xf32> -> vector<32x128xf32>
    %28 = vector.broadcast %11 : vector<32x1xf32> to vector<32x128xf32>
    %29 = arith.addf %27, %28 : vector<32x128xf32>
    %c0_22 = arith.constant 0 : index
    %c0_23 = arith.constant 0 : index
    %c0_24 = arith.constant 0 : index
    %30 = vector.load %arg3[%c0_22, %c0_23, %c0_24] : memref<2x32x128xf32, #tpu.memory_space<vmem>>, vector<1x32x128xf32>
    %31 = vector.shape_cast %30 : vector<1x32x128xf32> to vector<32x128xf32>
    %32 = vector.shape_cast %29 : vector<32x128xf32> to vector<1x32x128xf32>
    tpu.vector_store %arg3[%c0_22, %c0_23, %c0_24], %32 {strides = array<i32>} : memref<2x32x128xf32, #tpu.memory_space<vmem>>, vector<1x32x128xf32>,
    %c1_25 = arith.constant 1 : index
    %c0_26 = arith.constant 0 : index
    %c0_27 = arith.constant 0 : index
    %33 = vector.load %arg0[%c1_25, %c0_26, %c0_27] : memref<2x32x128xf32, #tpu.memory_space<vmem>>, vector<1x32x128xf32>
    %34 = vector.shape_cast %33 : vector<1x32x128xf32> to vector<32x128xf32>
    %35 = arith.truncf %34 : vector<32x128xf32> to vector<32x128xbf16>
    %cst_28 = arith.constant dense<0.000000e+00> : vector<32x128xf32>
    %36 = tpu.matmul %1, %35, %cst_28 {dimension_numbers = #tpu.dot_dimension_numbers<[1], [0], [0], [1], [0, 0, 1, 1], [], []>} : vector<32x32xbf16>, vector<32x128xbf16>, vector<32x128xf32> -> vector<32x128xf32>
    %37 = vector.broadcast %7 : vector<32x1xf32> to vector<32x128xf32>
    %38 = arith.addf %36, %37 : vector<32x128xf32>
    %cst_29 = arith.constant 0.000000e+00 : f32
    %39 = vector.broadcast %cst_29 : f32 to vector<32x128xf32>
    %40 = arith.maximumf %38, %39 : vector<32x128xf32>
    %41 = arith.truncf %40 : vector<32x128xf32> to vector<32x128xbf16>
    %cst_30 = arith.constant dense<0.000000e+00> : vector<32x128xf32>
    %42 = tpu.matmul %3, %41, %cst_30 {dimension_numbers = #tpu.dot_dimension_numbers<[1], [0], [0], [1], [0, 0, 1, 1], [], []>} : vector<32x32xbf16>, vector<32x128xbf16>, vector<32x128xf32> -> vector<32x128xf32>
    %43 = vector.broadcast %9 : vector<32x1xf32> to vector<32x128xf32>
    %44 = arith.addf %42, %43 : vector<32x128xf32>
    %cst_31 = arith.constant 0.000000e+00 : f32
    %45 = vector.broadcast %cst_31 : f32 to vector<32x128xf32>
    %46 = arith.maximumf %44, %45 : vector<32x128xf32>
    %47 = arith.truncf %46 : vector<32x128xf32> to vector<32x128xbf16>
    %cst_32 = arith.constant dense<0.000000e+00> : vector<32x128xf32>
    %48 = tpu.matmul %5, %47, %cst_32 {dimension_numbers = #tpu.dot_dimension_numbers<[1], [0], [0], [1], [0, 0, 1, 1], [], []>} : vector<32x32xbf16>, vector<32x128xbf16>, vector<32x128xf32> -> vector<32x128xf32>
    %49 = vector.broadcast %11 : vector<32x1xf32> to vector<32x128xf32>
    %50 = arith.addf %48, %49 : vector<32x128xf32>
    %c1_33 = arith.constant 1 : index
    %c0_34 = arith.constant 0 : index
    %c0_35 = arith.constant 0 : index
    %51 = vector.load %arg3[%c1_33, %c0_34, %c0_35] : memref<2x32x128xf32, #tpu.memory_space<vmem>>, vector<1x32x128xf32>
    %52 = vector.shape_cast %51 : vector<1x32x128xf32> to vector<32x128xf32>
    %53 = vector.shape_cast %50 : vector<32x128xf32> to vector<1x32x128xf32>
    tpu.vector_store %arg3[%c1_33, %c0_34, %c0_35], %53 {strides = array<i32>} : memref<2x32x128xf32, #tpu.memory_space<vmem>>, vector<1x32x128xf32>,
    return
  }
}

</mosaic_0001>

<bundles_post_ra>
// kernel: proposal_head.1
= control target key start
LH: loop header
LB: loop body
LE: loop exit
PB: predicated region body
PF: predicated region fallthrough
CT: control target
= control target key end

     0   :  { %8 = vsyncpa [#allocation3], 0  ;;  %s428_s15 = smov [#allocation2]   ;;  %s429_s17 = smov 64   ;;  %s575_s0 = inlined_call_operand.vmem [shape: f32[2,32,128], index: 0, kind: input, shape index: {}]   ;;  %s576_s1 = inlined_call_operand.hbm [shape: bf16[3,32,32], index: 1, kind: input, shape index: {}]   ;;  %s577_s2 = inlined_call_operand.vmem [shape: f32[3,32,1], index: 2, kind: input, shape index: {}]   ;;  %s578_s3 = inlined_call_operand.vmem [shape: f32[2,32,128], index: 3, kind: output, shape index: {}]  }
   0x1   :  { %s15_s14 = sshll.u32 %s576_s1, 4  ;;  %s17_s16 = sshll.u32 %s428_s15, 4  ;;  %s16_s14 = int_to_ptr.hbm [resolvable:$true] %s15_s14  ;;  %s18_s16 = int_to_ptr.vmem [resolvable:$true] %s17_s16 }
   0x2   :  { %s430_s18 = smov 4  }
   0x3   :  { %23 = dma.hbm_to_vmem [thread:$0]  %s16_s14, 768, %s18_s16, [#allocation3], %s429_s17, %s429_s17, %s430_s18  }
   0x4   :  { %426 = dma.done.wait [#allocation3], 768  }
   0x5   :  { %427 = vsyncadd [#allocation3], 4294966528  ;;  %v431_v0 = vmov 0   ;;  %v61_v1 = vld [vmem:[%s575_s0 + $0x10] sm:$0xff]  ;;  %v62_v2 = vld [vmem:[%s575_s0 + $0x18] sm:$0xff]  ;;  %vm95_vm0 = vcmask 261120  }
   0x6   :  { %399 = vset.pattern.permute.xlu0 %v431_v0  ;;  %400 = vset.pattern.permute.xlu1 %v431_v0  ;;  %v47_v3 = vld [vmem:[%s577_s2 + $0x10] sm:$0xff]  ;;  %v64_v4 = vpack.c.bf16 %v62_v2, %v61_v1  ;;  %v59_v5 = vld [vmem:[%s575_s0] sm:$0xff]  ;;  %v60_v6 = vld [vmem:[%s575_s0 + $0x8] sm:$0xff] }
   0x7   :  { %401 = vset.pattern.permute.xlu2 %v431_v0  ;;  %77 = vperm.xlu0 %399, %v47_v3   ;;  %v45_v7 = vld [vmem:[%s577_s2] sm:$0xff]  ;;  %v63_v8 = vpack.c.bf16 %v60_v6, %v59_v5  ;;  %v386_v9 = vld [vmem:[#allocation2 + $0x8] sm:$0xff]  ;;  %v48_v10 = vld [vmem:[%s577_s2 + $0x18] sm:$0xff] }
   0x8   :  { %67 = vperm.xlu1 %400, %v45_v7   ;;  %391 = vmatpush.bf16.msra.mxu2 %v64_v4  ;;  %v385_v11 = vld [vmem:[#allocation2] sm:$0xff]  ;;  %v46_v12 = vld [vmem:[%s577_s2 + $0x8] sm:$0xff]  ;;  %v339_v16 = vld [vmem:[%s577_s2 + $0x50] sm:$0xff] }
   0x9   :  { %108 = vmatpush.bf16.msra.mxu0 %v64_v4  ;;  %v333_v13 = vld [vmem:[%s577_s2 + $0x20] sm:$0xff]  ;;  %v334_v14 = vld [vmem:[%s577_s2 + $0x28] sm:$0xff]  ;;  %v373_v34 = vld [vmem:[%s575_s0 + $0x30] sm:$0xff] }
   0xa   :  { %v338_v15 = vld [vmem:[%s577_s2 + $0x48] sm:$0xff]  ;;  %v374_v35 = vld [vmem:[%s575_s0 + $0x38] sm:$0xff]  ;;  %v371_v38 = vld [vmem:[%s575_s0 + $0x20] sm:$0xff] }
   0xb   :  { %v253_v36 = vpack.c.bf16 %v374_v35, %v373_v34  ;;  %v372_v39 = vld [vmem:[%s575_s0 + $0x28] sm:$0xff]  ;;  %v387_v40 = vld [vmem:[#allocation2 + $0x10] sm:$0xff]  ;;  %v388_v41 = vld [vmem:[#allocation2 + $0x18] sm:$0xff] }
   0xc   :  { %392 = vmatpush.bf16.msra.mxu2 %v63_v8  ;;  %v252_v42 = vpack.c.bf16 %v372_v39, %v371_v38  ;;  %v335_v43 = vld [vmem:[%s577_s2 + $0x30] sm:$0xff]  ;;  %v336_v44 = vld [vmem:[%s577_s2 + $0x38] sm:$0xff]  ;;  %v389_v0 = vld [vmem:[#allocation2 + $0x20] sm:$0xff] }
   0xd   :  { %109 = vmatpush.bf16.msra.mxu0 %v63_v8  ;;  %139 = vperm.xlu2 %401, %v335_v43   ;;  %v390_v3 = vld [vmem:[#allocation2 + $0x28] sm:$0xff]  ;;  %v337_v4 = vld [vmem:[%s577_s2 + $0x40] sm:$0xff] }
   0xf   :  { %82 = vperm.xlu0 %399, %v48_v10   ;;  %350 = vmatmul.msk.bf16.vlgmr.msra.gmra.mxu2 %vm95_vm0, %v386_v9 }
  0x10   :  { %349 = vmatmul.msk.bf16.vlgmr.msra.gmra.mxu0 %vm95_vm0, %v385_v11  ;;  %72 = vperm.xlu1 %400, %v46_v12   ;;  %v340_v12 = vld [vmem:[%s577_s2 + $0x58] sm:$0xff] }
  0x15   :  { %144 = vperm.xlu2 %401, %v336_v44  }
  0x17   :  { %129 = vperm.xlu0 %399, %v333_v13  }
  0x18   :  { %134 = vperm.xlu1 %400, %v334_v14  }
  0x1d   :  { %190 = vperm.xlu2 %401, %v337_v4  }
  0x1f   :  { %195 = vperm.xlu0 %399, %v338_v15  }
  0x20   :  { %200 = vperm.xlu1 %400, %v339_v16  }
  0x25   :  { %205 = vperm.xlu2 %401, %v340_v12  }
  0x67   :  { %v527_v46 = vpop.permute.xlu2 %139 }
  0x6f   :  { %v529_v49 = vpop.permute.xlu2 %144 }
  0x79   :  { %v493_v18 = vpop.permute.xlu0 %77 }
  0x7a   :  { %v495_v19 = vpop.permute.xlu1 %67 }
  0x81   :  { %v497_v22 = vpop.permute.xlu0 %82 }
  0x82   :  { %v500_v24 = vpop.permute.xlu1 %72 }
  0x89   :  { %v130_v55 = vpop.permute.xlu0 %129 }
  0x8a   :  { %v135_v51 = vpop.permute.xlu1 %134 }
  0x8d   :  { %v111_v17 = vpop.f32.mrf.mxu0 }
  0x8e   :  { %v112_v26 = vadd.f32 %v111_v17, %v495_v19 }
  0x90   :  { %v121_v31 = vmax.f32 %v112_v26, 0.0 }
  0x92   :  { %v116_v20 = vpop.f32.mrf.mxu2 }
  0x93   :  { %v117_v23 = vadd.f32 %v116_v20, %v493_v18  ;;  %v196_v20 = vpop.permute.xlu0 %195 }
  0x95   :  { %v113_v21 = vpop.f32.mrf.mxu0  ;;  %v123_v29 = vmax.f32 %v117_v23, 0.0  ;;  %v201_v23 = vpop.permute.xlu1 %200 }
  0x96   :  { %v114_v27 = vadd.f32 %v113_v21, %v500_v24 }
  0x98   :  { %v122_v32 = vmax.f32 %v114_v27, 0.0 }
  0x9a   :  { %v118_v25 = vpop.f32.mrf.mxu2  ;;  %v125_v37 = vpack.c.bf16 %v122_v32, %v121_v31 }
  0x9b   :  { %v119_v28 = vadd.f32 %v118_v25, %v497_v22 }
  0x9d   :  { %v124_v30 = vmax.f32 %v119_v28, 0.0 }
  0x9f   :  { %v126_v33 = vpack.c.bf16 %v124_v30, %v123_v29 }
  0xa1   :  { %169 = vmatpush.bf16.msra.mxu1 %v126_v33  ;;  %393 = vmatpush.bf16.msra.mxu3 %v126_v33 }
  0xa5   :  { %170 = vmatpush.bf16.msra.mxu1 %v125_v37  ;;  %394 = vmatpush.bf16.msra.mxu3 %v125_v37 }
  0xa8   :  { %359 = vmatmul.msk.bf16.vlgmr.msra.gmra.mxu1 %vm95_vm0, %v387_v40  ;;  %360 = vmatmul.msk.bf16.vlgmr.msra.gmra.mxu3 %vm95_vm0, %v388_v41 }
  0xa9   :  { %260 = vmatpush.bf16.msrb.mxu3 %v253_v36 }
  0xad   :  { %261 = vmatpush.bf16.msrb.mxu3 %v252_v42 }
  0xb8   :  { %375 = vmatmul.msk.bf16.vlgmr.msrb.gmra.mxu3 %vm95_vm0, %v385_v11 }
  0xc8   :  { %376 = vmatmul.msk.bf16.gmra.mxu3 %vm95_vm0, %v386_v9 }
 0x125   :  { %v172_v45 = vpop.f32.mrf.mxu1 }
 0x126   :  { %v173_v56 = vadd.f32 %v172_v45, %v130_v55 }
 0x128   :  { %v182_v61 = vmax.f32 %v173_v56, 0.0 }
 0x12b   :  { %v177_v47 = vpop.f32.mrf.mxu3 }
 0x12c   :  { %v178_v50 = vadd.f32 %v177_v47, %v527_v46 }
 0x12d   :  { %v174_v48 = vpop.f32.mrf.mxu1 }
 0x12e   :  { %v175_v53 = vadd.f32 %v174_v48, %v135_v51  ;;  %v184_v57 = vmax.f32 %v178_v50, 0.0 }
 0x130   :  { %v183_v59 = vmax.f32 %v175_v53, 0.0 }
 0x132   :  { %v186_v63 = vpack.c.bf16 %v183_v59, %v182_v61 }
 0x133   :  { %v179_v52 = vpop.f32.mrf.mxu3 }
 0x134   :  { %v180_v54 = vadd.f32 %v179_v52, %v529_v49 }
 0x136   :  { %v185_v58 = vmax.f32 %v180_v54, 0.0 }
 0x138   :  { %v187_v60 = vpack.c.bf16 %v185_v58, %v184_v57 }
 0x13a   :  { %230 = vmatpush.bf16.msrb.mxu2 %v187_v60 }
 0x13b   :  { %v263_v62 = vpop.f32.mrf.mxu3 }
 0x13c   :  { %v264_v9 = vadd.f32 %v263_v62, %v495_v19 }
 0x13e   :  { %231 = vmatpush.bf16.msrb.mxu2 %v186_v63  ;;  %v273_v15 = vmax.f32 %v264_v9, 0.0 }
 0x141   :  { %369 = vmatmul.msk.bf16.vlgmr.msrb.gmra.mxu2 %vm95_vm0, %v389_v0 }
 0x143   :  { %v265_v1 = vpop.f32.mrf.mxu3 }
 0x144   :  { %v266_v7 = vadd.f32 %v265_v1, %v500_v24 }
 0x146   :  { %v274_v13 = vmax.f32 %v266_v7, 0.0 }
 0x148   :  { %v277_v16 = vpack.c.bf16 %v274_v13, %v273_v15 }
 0x14b   :  { %v268_v2 = vpop.f32.mrf.mxu3 }
 0x14c   :  { %v269_v5 = vadd.f32 %v268_v2, %v493_v18  ;;  %v191_v18 = vpop.permute.xlu2 %190 }
 0x14e   :  { %v275_v10 = vmax.f32 %v269_v5, 0.0 }
 0x151   :  { %370 = vmatmul.msk.bf16.gmra.mxu2 %vm95_vm0, %v390_v3 }
 0x153   :  { %v270_v6 = vpop.f32.mrf.mxu3 }
 0x154   :  { %v271_v8 = vadd.f32 %v270_v6, %v497_v22  ;;  %v206_v26 = vpop.permute.xlu2 %205 }
 0x156   :  { %v276_v11 = vmax.f32 %v271_v8, 0.0 }
 0x158   :  { %v278_v14 = vpack.c.bf16 %v276_v11, %v275_v10 }
 0x15a   :  { %285 = vmatpush.bf16.msrb.mxu0 %v278_v14 }
 0x15e   :  { %286 = vmatpush.bf16.msrb.mxu0 %v277_v16 }
 0x161   :  { %377 = vmatmul.msk.bf16.vlgmr.msrb.gmra.mxu0 %vm95_vm0, %v387_v40 }
 0x171   :  { %378 = vmatmul.msk.bf16.gmra.mxu0 %vm95_vm0, %v388_v41 }
 0x1c4   :  { %v233_v17 = vpop.f32.mrf.mxu2 }
 0x1c5   :  { %v234_v19 = vadd.f32 %v233_v17, %v191_v18 }
 0x1c7   :  { %243 = vst [vmem:[%s578_s3] sm:$0xff] %v234_v19 }
 0x1cc   :  { %v235_v21 = vpop.f32.mrf.mxu2 }
 0x1cd   :  { %v236_v22 = vadd.f32 %v235_v21, %v196_v20 }
 0x1cf   :  { %244 = vst [vmem:[%s578_s3 + $0x8] sm:$0xff] %v236_v22 }
 0x1d4   :  { %v238_v24 = vpop.f32.mrf.mxu2 }
 0x1d5   :  { %v239_v25 = vadd.f32 %v238_v24, %v201_v23 }
 0x1d7   :  { %245 = vst [vmem:[%s578_s3 + $0x10] sm:$0xff] %v239_v25 }
 0x1dc   :  { %v240_v27 = vpop.f32.mrf.mxu2 }
 0x1dd   :  { %v241_v28 = vadd.f32 %v240_v27, %v206_v26 }
 0x1de   :  { %v288_v29 = vpop.f32.mrf.mxu0 }
 0x1df   :  { %246 = vst [vmem:[%s578_s3 + $0x18] sm:$0xff] %v241_v28  ;;  %v289_v36 = vadd.f32 %v288_v29, %v130_v55 }
 0x1e1   :  { %v298_v41 = vmax.f32 %v289_v36, 0.0 }
 0x1e6   :  { %v290_v30 = vpop.f32.mrf.mxu0 }
 0x1e7   :  { %v291_v34 = vadd.f32 %v290_v30, %v135_v51 }
 0x1e9   :  { %v299_v39 = vmax.f32 %v291_v34, 0.0 }
 0x1eb   :  { %v302_v42 = vpack.c.bf16 %v299_v39, %v298_v41 }
 0x1ee   :  { %v293_v31 = vpop.f32.mrf.mxu0 }
 0x1ef   :  { %v294_v32 = vadd.f32 %v293_v31, %v527_v46 }
 0x1f1   :  { %v300_v37 = vmax.f32 %v294_v32, 0.0 }
 0x1f6   :  { %v295_v33 = vpop.f32.mrf.mxu0 }
 0x1f7   :  { %v296_v35 = vadd.f32 %v295_v33, %v529_v49 }
 0x1f9   :  { %v301_v38 = vmax.f32 %v296_v35, 0.0 }
 0x1fb   :  { %v303_v40 = vpack.c.bf16 %v301_v38, %v300_v37 }
 0x1fd   :  { %310 = vmatpush.bf16.msrb.mxu1 %v303_v40 }
 0x201   :  { %311 = vmatpush.bf16.msrb.mxu1 %v302_v42 }
 0x204   :  { %379 = vmatmul.msk.bf16.vlgmr.msrb.gmra.mxu1 %vm95_vm0, %v389_v0 }
 0x214   :  { %380 = vmatmul.msk.bf16.gmra.mxu1 %vm95_vm0, %v390_v3 }
 0x281   :  { %v313_v43 = vpop.f32.mrf.mxu1 }
 0x282   :  { %v314_v44 = vadd.f32 %v313_v43, %v191_v18 }
 0x284   :  { %381 = vst [vmem:[%s578_s3 + $0x20] sm:$0xff] %v314_v44 }
 0x289   :  { %v315_v45 = vpop.f32.mrf.mxu1 }
 0x28a   :  { %v316_v46 = vadd.f32 %v315_v45, %v196_v20 }
 0x28c   :  { %382 = vst [vmem:[%s578_s3 + $0x28] sm:$0xff] %v316_v46 }
 0x291   :  { %v318_v47 = vpop.f32.mrf.mxu1 }
 0x292   :  { %v319_v48 = vadd.f32 %v318_v47, %v201_v23 }
 0x294   :  { %383 = vst [vmem:[%s578_s3 + $0x30] sm:$0xff] %v319_v48 }
 0x299   :  { %v320_v49 = vpop.f32.mrf.mxu1 }
 0x29a   :  { %v321_v50 = vadd.f32 %v320_v49, %v206_v26 }
 0x29c   :  { %384 = vst [vmem:[%s578_s3 + $0x38] sm:$0xff] %v321_v50 }
 0x29d   :  { %332 = vsyncpa [#allocation3], 1 }

</bundles_post_ra>
